<compile_context>
chip_gen: v6e
topology: v6e:2x2x1
jax: 0.10.0
libtpu: 0.0.40
codegen_flags: <defaults>
</compile_context>

<pallas_src>
import math
import numpy as np
import jax
import jax.numpy as jnp
from jax.experimental import pallas as pl
from jax.experimental.pallas import tpu as pltpu

EMBED_DIM = 32
N_QUBITS = 4
N_LAYERS = 2
BATCH = 2
SEQ = 8
DIM_PSI = 2 ** N_QUBITS            # 16 statevector amplitudes
PAIRS = SEQ * SEQ                  # 64 (i, j) pairs, flattened into lanes
INV_SQRT_NQ = 1.0 / math.sqrt(N_QUBITS)
_SEQ_SHIFT = SEQ.bit_length() - 1  # SEQ is a power of two
_SEQ_MASK = SEQ - 1


# ---------------------------------------------------------------------------
# Glue: fold the fixed (weight-dependent) part of the quantum circuit into a
# single real 16x16 observable matrix A.  Pure numpy, runs once at setup.
# ---------------------------------------------------------------------------
def _build_observable_matrix(weights: np.ndarray) -> np.ndarray:
    n = N_QUBITS
    dim = 2 ** n
    I2 = np.eye(2, dtype=np.complex128)

    def single(gate, wire):
        out = np.array([[1.0 + 0j]])
        for w in range(n):
            out = np.kron(out, gate if w == wire else I2)   # wire 0 = MSB (PennyLane order)
        return out

    def rx(t):
        c, s = np.cos(t / 2), np.sin(t / 2)
        return np.array([[c, -1j * s], [-1j * s, c]], dtype=np.complex128)

    def ry(t):
        c, s = np.cos(t / 2), np.sin(t / 2)
        return np.array([[c, -s], [s, c]], dtype=np.complex128)

    def rz(t):
        return np.array([[np.exp(-1j * t / 2), 0], [0, np.exp(1j * t / 2)]],
                        dtype=np.complex128)

    def cnot(control, target):
        m = np.zeros((dim, dim), dtype=np.complex128)
        for idx in range(dim):
            bits = [(idx >> (n - 1 - w)) & 1 for w in range(n)]
            if bits[control] == 1:
                bits[target] ^= 1
            new_idx = sum(b << (n - 1 - w) for w, b in enumerate(bits))
            m[new_idx, idx] = 1.0
        return m

    U = np.eye(dim, dtype=np.complex128)
    p = 0
    for _ in range(N_LAYERS):
        for w in range(n):
            U = single(rx(weights[p]), w) @ U
            U = single(ry(weights[p + 1]), w) @ U
            U = single(rz(weights[p + 2]), w) @ U
            p += 3
        for w in range(n - 1):
            U = cnot(w, w + 1) @ U
        if n > 2:
            U = cnot(n - 1, 0) @ U

    Z = np.array([[1.0, 0.0], [0.0, -1.0]], dtype=np.complex128)
    M = np.zeros((dim, dim), dtype=np.complex128)
    for w in range(n):
        M += U.conj().T @ single(Z, w) @ U
    return np.real(M).astype(np.float32)


# ---------------------------------------------------------------------------
# Pallas kernel: one batch element per grid step (batch axis is "parallel").
# ---------------------------------------------------------------------------
def _qattn_kernel(xt_ref, wqkv_ref, bqkv_ref, a_ref, wo_ref, bo_ref,
                  out_ref, attn_ref):
    x_t = xt_ref[0]                                                   # (E, S) = (32, 8)

    # ---- fused Q/K/V projection, transposed orientation: (12, 32) @ (32, 8) -> (12, 8)
    qkv_t = jnp.dot(wqkv_ref[...], x_t,
                    preferred_element_type=jnp.float32) + bqkv_ref[...]
    q_t = jnp.tanh(qkv_t[0:N_QUBITS, :])                              # (4, 8)
    k_t = jnp.tanh(qkv_t[N_QUBITS:2 * N_QUBITS, :])                   # (4, 8)
    v_t = qkv_t[2 * N_QUBITS:3 * N_QUBITS, :]                         # (4, 8)

    # ---- 0/1 selector matrices (from 2-D iota). Pair index p = i*S + j lives in lanes.
    row = jax.lax.broadcasted_iota(jnp.int32, (SEQ, PAIRS), 0)
    pair = jax.lax.broadcasted_iota(jnp.int32, (SEQ, PAIRS), 1)
    sel_q = jnp.where((pair >> _SEQ_SHIFT) == row, 1.0, 0.0)          # (8, 64) picks i = p // S
    sel_k = jnp.where((pair & _SEQ_MASK) == row, 1.0, 0.0)            # (8, 64) picks j = p %  S

    # ---- theta[w, i*S + j] = tanh(q[i, w] + k[j, w]); expand on the MXU (no reshapes).
    qe = jnp.dot(q_t, sel_q, preferred_element_type=jnp.float32)      # (4, 64)
    ke = jnp.dot(k_t, sel_k, preferred_element_type=jnp.float32)      # (4, 64)
    theta = jnp.tanh(qe + ke)
    half = 0.5 * theta
    c = jnp.cos(half)                                                 # (4, 64)
    s = jnp.sin(half)                                                 # (4, 64)

    # ---- real RY product-state amplitudes, Kronecker-factored (wire 0 = MSB).
    #      psi[m, p] = prod_w (sin if bit_w(m) else cos)(theta[w, p] / 2)
    cs1 = jnp.concatenate([c[1:2], s[1:2]], axis=0)                   # (2, 64)
    front = jnp.concatenate([c[0:1] * cs1, s[0:1] * cs1], axis=0)     # (4, 64): c0c1,c0s1,s0c1,s0s1
    cs3 = jnp.concatenate([c[3:4], s[3:4]], axis=0)                   # (2, 64)
    back = jnp.concatenate([c[2:3] * cs3, s[2:3] * cs3], axis=0)      # (4, 64): c2c3,c2s3,s2c3,s2s3
    psi = jnp.concatenate([front[0:1] * back, front[1:2] * back,
                           front[2:3] * back, front[3:4] * back], axis=0)   # (16, 64)

    # ---- attention scores: psi^T A psi for every pair, via one MXU matmul.
    w = jnp.dot(a_ref[...], psi, preferred_element_type=jnp.float32)  # (16, 64)
    flat = jnp.sum(psi * w, axis=0, keepdims=True)                    # (1, 64)

    # unflatten the pair axis back to (S, S) with the same selectors (MXU, no relayout):
    # scores[i, j] = sum_p sel_q[i, p] * flat[p] * sel_k[j, p] = flat[i*S + j]
    scores = jax.lax.dot_general(sel_q * flat, sel_k,
                                 (((1,), (1,)), ((), ())),
                                 preferred_element_type=jnp.float32)  # (8, 8)
    scores = scores * INV_SQRT_NQ

    # ---- softmax over keys; divide goes to the EUP via approx reciprocal.
    m = jnp.max(scores, axis=-1, keepdims=True)
    e = jnp.exp(scores - m)
    attn = e * pl.reciprocal(jnp.sum(e, axis=-1, keepdims=True), approx=True)   # (8, 8)

    # ---- attended values (attn @ v, with v = v_t^T handled by the contraction) + out proj.
    attended = jax.lax.dot_general(attn, v_t, (((1,), (1,)), ((), ())),
                                   preferred_element_type=jnp.float32)          # (8, 4)
    out = jnp.dot(attended, wo_ref[...],
                  preferred_element_type=jnp.float32) + bo_ref[...]             # (8, 32)

    out_ref[0] = out.astype(out_ref.dtype)
    attn_ref[0] = attn.astype(attn_ref.dtype)


def quantum_attention_pallas(x, wq, bq, wk, bk, wv, bv, a_mat, wo, bo):
    batch, seq, embed = x.shape
    nq = wq.shape[1]

    # Host/XLA-side layout plumbing: transpose activations and fuse the QKV weights so the
    # kernel does a single projection matmul and works in the (feature, pair-lane) layout.
    x_t = jnp.transpose(x, (0, 2, 1))                                 # (B, E, S)
    wqkv_t = jnp.transpose(jnp.concatenate([wq, wk, wv], axis=1))     # (3*NQ, E)
    bqkv_t = jnp.transpose(jnp.concatenate([bq, bk, bv], axis=1))     # (3*NQ, 1)

    grid_spec = pl.GridSpec(
        grid=(batch,),
        in_specs=[
            pl.BlockSpec((1, embed, seq), lambda b: (b, 0, 0)),
            pl.BlockSpec((3 * nq, embed), lambda b: (0, 0)),
            pl.BlockSpec((3 * nq, 1), lambda b: (0, 0)),
            pl.BlockSpec((DIM_PSI, DIM_PSI), lambda b: (0, 0)),       # A stays in VMEM (MXU operand)
            pl.BlockSpec((nq, embed), lambda b: (0, 0)),
            pl.BlockSpec((1, embed), lambda b: (0, 0)),
        ],
        out_specs=[
            pl.BlockSpec((1, seq, embed), lambda b: (b, 0, 0)),
            pl.BlockSpec((1, seq, seq), lambda b: (b, 0, 0)),
        ],
    )
    out_shapes = [
        jax.ShapeDtypeStruct((batch, seq, embed), jnp.float32),
        jax.ShapeDtypeStruct((batch, seq, seq), jnp.float32),
    ]
    return pl.pallas_call(
        _qattn_kernel,
        grid_spec=grid_spec,
        out_shape=out_shapes,
        # "parallel": on v7x the two batch steps shard across the 2 TensorCores; neutral on
        # single-TC v5e/v6e (per-step overhead there is ~0.35us x 2, negligible vs the body).
        compiler_params=pltpu.CompilerParams(dimension_semantics=("parallel",)),
    )(x_t, wqkv_t, bqkv_t, a_mat, wo, bo)


# ---------------------------------------------------------------------------
# Plain-JAX reference (same math) for a correctness check.
# ---------------------------------------------------------------------------
def reference_forward(x, wq, bq, wk, bk, wv, bv, a_mat, wo, bo):
    hp = jax.lax.Precision.HIGHEST
    q = jnp.tanh(jnp.dot(x, wq, precision=hp) + bq)
    k = jnp.tanh(jnp.dot(x, wk, precision=hp) + bk)
    v = jnp.dot(x, wv, precision=hp) + bv
    theta = jnp.tanh(q[:, :, None, :] + k[:, None, :, :])            # (B,S,S,NQ)
    c = jnp.cos(theta * 0.5)
    s = jnp.sin(theta * 0.5)
    cols = []
    for idx in range(DIM_PSI):
        amp = jnp.ones(theta.shape[:-1], jnp.float32)
        for w in range(N_QUBITS):
            bit = (idx >> (N_QUBITS - 1 - w)) & 1
            amp = amp * (s[..., w] if bit else c[..., w])
        cols.append(amp)
    psi = jnp.stack(cols, axis=-1)                                    # (B,S,S,16)
    scores = jnp.einsum('bijm,mn,bijn->bij', psi, a_mat, psi, precision=hp)
    attn = jax.nn.softmax(scores * INV_SQRT_NQ, axis=-1)
    attended = jnp.einsum('bij,bjd->bid', attn, v, precision=hp)
    out = jnp.dot(attended, wo, precision=hp) + bo
    return out, attn


if __name__ == "__main__":
    key = jax.random.PRNGKey(0)
    keys = jax.random.split(key, 10)

    x = jax.random.normal(keys[0], (BATCH, SEQ, EMBED_DIM), dtype=jnp.float32)

    lim_in = 1.0 / math.sqrt(EMBED_DIM)
    lim_q = 1.0 / math.sqrt(N_QUBITS)
    wq = jax.random.uniform(keys[1], (EMBED_DIM, N_QUBITS), jnp.float32, -lim_in, lim_in)
    bq = jax.random.uniform(keys[2], (1, N_QUBITS), jnp.float32, -lim_in, lim_in)
    wk = jax.random.uniform(keys[3], (EMBED_DIM, N_QUBITS), jnp.float32, -lim_in, lim_in)
    bk = jax.random.uniform(keys[4], (1, N_QUBITS), jnp.float32, -lim_in, lim_in)
    wv = jax.random.uniform(keys[5], (EMBED_DIM, N_QUBITS), jnp.float32, -lim_in, lim_in)
    bv = jax.random.uniform(keys[6], (1, N_QUBITS), jnp.float32, -lim_in, lim_in)
    wo = jax.random.uniform(keys[7], (N_QUBITS, EMBED_DIM), jnp.float32, -lim_q, lim_q)
    bo = jax.random.uniform(keys[8], (1, EMBED_DIM), jnp.float32, -lim_q, lim_q)

    quantum_weights = 0.1 * np.asarray(
        jax.random.normal(keys[9], (N_LAYERS * N_QUBITS * 3,), jnp.float32), dtype=np.float64)
    a_mat = jnp.asarray(_build_observable_matrix(quantum_weights), dtype=jnp.float32)

    run = jax.jit(quantum_attention_pallas)
    out, attn = run(x, wq, bq, wk, bk, wv, bv, a_mat, wo, bo)
    jax.block_until_ready((out, attn))

    ref_out, ref_attn = reference_forward(x, wq, bq, wk, bk, wv, bv, a_mat, wo, bo)
    assert np.allclose(np.asarray(attn), np.asarray(ref_attn), rtol=2e-3, atol=2e-3)
    assert np.allclose(np.asarray(out), np.asarray(ref_out), rtol=2e-3, atol=2e-3)

    print("KERNEL_OK")
</pallas_src>

<mosaic_0001>
module attributes {stable_mosaic.version = 11 : i64} {
  func.func @_qattn_kernel(%arg0: i32, %arg1: memref<1x32x8xf32, #tpu.memory_space<vmem>>, %arg2: memref<12x32xf32, #tpu.memory_space<vmem>>, %arg3: memref<12x1xf32, #tpu.memory_space<vmem>>, %arg4: memref<16x16xf32, #tpu.memory_space<vmem>>, %arg5: memref<4x32xf32, #tpu.memory_space<vmem>>, %arg6: memref<1x32xf32, #tpu.memory_space<vmem>>, %arg7: memref<1x8x32xf32, #tpu.memory_space<vmem>>, %arg8: memref<1x8x8xf32, #tpu.memory_space<vmem>>) attributes {dimension_semantics = [#tpu.dimension_semantics<parallel>], iteration_bounds = array<i64: 2>, scalar_prefetch = 0 : i64, scratch_operands = 0 : i64, tpu.core_type = #tpu.core_type<tc>, window_params = [{transform_indices = @transform_0, window_bounds = array<i64: 1, 32, 8>}, {pipeline_mode = #tpu.pipeline_mode<synchronous>, transform_indices = @transform_1, window_bounds = array<i64: 12, 32>}, {pipeline_mode = #tpu.pipeline_mode<synchronous>, transform_indices = @transform_2, window_bounds = array<i64: 12, 1>}, {pipeline_mode = #tpu.pipeline_mode<synchronous>, transform_indices = @transform_3, window_bounds = array<i64: 16, 16>}, {pipeline_mode = #tpu.pipeline_mode<synchronous>, transform_indices = @transform_4, window_bounds = array<i64: 4, 32>}, {pipeline_mode = #tpu.pipeline_mode<synchronous>, transform_indices = @transform_5, window_bounds = array<i64: 1, 32>}, {transform_indices = @transform_6, window_bounds = array<i64: 1, 8, 32>}, {transform_indices = @transform_7, window_bounds = array<i64: 1, 8, 8>}]} {
    %c0 = arith.constant 0 : index
    %c0_0 = arith.constant 0 : index
    %c0_1 = arith.constant 0 : index
    %0 = vector.load %arg1[%c0, %c0_0, %c0_1] : memref<1x32x8xf32, #tpu.memory_space<vmem>>, vector<1x32x8xf32>
    %1 = vector.shape_cast %0 : vector<1x32x8xf32> to vector<32x8xf32>
    %c0_2 = arith.constant 0 : index
    %c0_3 = arith.constant 0 : index
    %2 = vector.load %arg2[%c0_2, %c0_3] : memref<12x32xf32, #tpu.memory_space<vmem>>, vector<12x32xf32>
    %cst = arith.constant dense<0.000000e+00> : vector<12x8xf32>
    %3 = tpu.matmul %2, %1, %cst {dimension_numbers = #tpu.dot_dimension_numbers<[1], [0], [0], [1], [0, 0, 1, 1], [], []>} : vector<12x32xf32>, vector<32x8xf32>, vector<12x8xf32> -> vector<12x8xf32>
    %c0_4 = arith.constant 0 : index
    %c0_5 = arith.constant 0 : index
    %4 = vector.load %arg3[%c0_4, %c0_5] : memref<12x1xf32, #tpu.memory_space<vmem>>, vector<12x1xf32>
    %5 = vector.broadcast %4 : vector<12x1xf32> to vector<12x8xf32>
    %6 = arith.addf %3, %5 : vector<12x8xf32>
    %7 = vector.extract_strided_slice %6 {offsets = [0, 0], sizes = [4, 8], strides = [1, 1]} : vector<12x8xf32> to vector<4x8xf32>
    %8 = math.tanh %7 : vector<4x8xf32>
    %9 = vector.extract_strided_slice %6 {offsets = [4, 0], sizes = [4, 8], strides = [1, 1]} : vector<12x8xf32> to vector<4x8xf32>
    %10 = math.tanh %9 : vector<4x8xf32>
    %11 = vector.extract_strided_slice %6 {offsets = [8, 0], sizes = [4, 8], strides = [1, 1]} : vector<12x8xf32> to vector<4x8xf32>
    %12 = tpu.iota {dimensions = array<i32: 0>} : vector<8x64xi32>
    %13 = tpu.iota {dimensions = array<i32: 1>} : vector<8x64xi32>
    %c3_i32 = arith.constant 3 : i32
    %14 = vector.broadcast %c3_i32 : i32 to vector<8x64xi32>
    %15 = arith.shrsi %13, %14 : vector<8x64xi32>
    %16 = arith.cmpi eq, %15, %12 : vector<8x64xi32>
    %cst_6 = arith.constant 1.000000e+00 : f32
    %cst_7 = arith.constant 0.000000e+00 : f32
    %17 = vector.broadcast %cst_6 : f32 to vector<8x64xf32>
    %18 = vector.broadcast %cst_7 : f32 to vector<8x64xf32>
    %19 = arith.select %16, %17, %18 : vector<8x64xi1>, vector<8x64xf32>
    %c7_i32 = arith.constant 7 : i32
    %20 = vector.broadcast %c7_i32 : i32 to vector<8x64xi32>
    %21 = arith.andi %13, %20 : vector<8x64xi32>
    %22 = arith.cmpi eq, %21, %12 : vector<8x64xi32>
    %cst_8 = arith.constant 1.000000e+00 : f32
    %cst_9 = arith.constant 0.000000e+00 : f32
    %23 = vector.broadcast %cst_8 : f32 to vector<8x64xf32>
    %24 = vector.broadcast %cst_9 : f32 to vector<8x64xf32>
    %25 = arith.select %22, %23, %24 : vector<8x64xi1>, vector<8x64xf32>
    %cst_10 = arith.constant dense<0.000000e+00> : vector<4x64xf32>
    %26 = tpu.matmul %8, %19, %cst_10 {dimension_numbers = #tpu.dot_dimension_numbers<[1], [0], [0], [1], [0, 0, 1, 1], [], []>} : vector<4x8xf32>, vector<8x64xf32>, vector<4x64xf32> -> vector<4x64xf32>
    %cst_11 = arith.constant dense<0.000000e+00> : vector<4x64xf32>
    %27 = tpu.matmul %10, %25, %cst_11 {dimension_numbers = #tpu.dot_dimension_numbers<[1], [0], [0], [1], [0, 0, 1, 1], [], []>} : vector<4x8xf32>, vector<8x64xf32>, vector<4x64xf32> -> vector<4x64xf32>
    %28 = arith.addf %26, %27 : vector<4x64xf32>
    %29 = math.tanh %28 : vector<4x64xf32>
    %cst_12 = arith.constant 5.000000e-01 : f32
    %30 = vector.broadcast %cst_12 : f32 to vector<4x64xf32>
    %31 = arith.mulf %30, %29 : vector<4x64xf32>
    %32 = math.cos %31 : vector<4x64xf32>
    %33 = math.sin %31 : vector<4x64xf32>
    %34 = vector.extract_strided_slice %32 {offsets = [1, 0], sizes = [1, 64], strides = [1, 1]} : vector<4x64xf32> to vector<1x64xf32>
    %35 = vector.extract_strided_slice %33 {offsets = [1, 0], sizes = [1, 64], strides = [1, 1]} : vector<4x64xf32> to vector<1x64xf32>
    %36 = tpu.concatenate %34, %35 in 0 : vector<1x64xf32>, vector<1x64xf32> -> vector<2x64xf32>
    %37 = vector.extract_strided_slice %32 {offsets = [0, 0], sizes = [1, 64], strides = [1, 1]} : vector<4x64xf32> to vector<1x64xf32>
    %38 = vector.broadcast %37 : vector<1x64xf32> to vector<2x64xf32>
    %39 = arith.mulf %38, %36 : vector<2x64xf32>
    %40 = vector.extract_strided_slice %33 {offsets = [0, 0], sizes = [1, 64], strides = [1, 1]} : vector<4x64xf32> to vector<1x64xf32>
    %41 = vector.broadcast %40 : vector<1x64xf32> to vector<2x64xf32>
    %42 = arith.mulf %41, %36 : vector<2x64xf32>
    %43 = tpu.concatenate %39, %42 in 0 : vector<2x64xf32>, vector<2x64xf32> -> vector<4x64xf32>
    %44 = vector.extract_strided_slice %32 {offsets = [3, 0], sizes = [1, 64], strides = [1, 1]} : vector<4x64xf32> to vector<1x64xf32>
    %45 = vector.extract_strided_slice %33 {offsets = [3, 0], sizes = [1, 64], strides = [1, 1]} : vector<4x64xf32> to vector<1x64xf32>
    %46 = tpu.concatenate %44, %45 in 0 : vector<1x64xf32>, vector<1x64xf32> -> vector<2x64xf32>
    %47 = vector.extract_strided_slice %32 {offsets = [2, 0], sizes = [1, 64], strides = [1, 1]} : vector<4x64xf32> to vector<1x64xf32>
    %48 = vector.broadcast %47 : vector<1x64xf32> to vector<2x64xf32>
    %49 = arith.mulf %48, %46 : vector<2x64xf32>
    %50 = vector.extract_strided_slice %33 {offsets = [2, 0], sizes = [1, 64], strides = [1, 1]} : vector<4x64xf32> to vector<1x64xf32>
    %51 = vector.broadcast %50 : vector<1x64xf32> to vector<2x64xf32>
    %52 = arith.mulf %51, %46 : vector<2x64xf32>
    %53 = tpu.concatenate %49, %52 in 0 : vector<2x64xf32>, vector<2x64xf32> -> vector<4x64xf32>
    %54 = vector.extract_strided_slice %43 {offsets = [0, 0], sizes = [1, 64], strides = [1, 1]} : vector<4x64xf32> to vector<1x64xf32>
    %55 = vector.broadcast %54 : vector<1x64xf32> to vector<4x64xf32>
    %56 = arith.mulf %55, %53 : vector<4x64xf32>
    %57 = vector.extract_strided_slice %43 {offsets = [1, 0], sizes = [1, 64], strides = [1, 1]} : vector<4x64xf32> to vector<1x64xf32>
    %58 = vector.broadcast %57 : vector<1x64xf32> to vector<4x64xf32>
    %59 = arith.mulf %58, %53 : vector<4x64xf32>
    %60 = vector.extract_strided_slice %43 {offsets = [2, 0], sizes = [1, 64], strides = [1, 1]} : vector<4x64xf32> to vector<1x64xf32>
    %61 = vector.broadcast %60 : vector<1x64xf32> to vector<4x64xf32>
    %62 = arith.mulf %61, %53 : vector<4x64xf32>
    %63 = vector.extract_strided_slice %43 {offsets = [3, 0], sizes = [1, 64], strides = [1, 1]} : vector<4x64xf32> to vector<1x64xf32>
    %64 = vector.broadcast %63 : vector<1x64xf32> to vector<4x64xf32>
    %65 = arith.mulf %64, %53 : vector<4x64xf32>
    %66 = tpu.concatenate %56, %59, %62, %65 in 0 : vector<4x64xf32>, vector<4x64xf32>, vector<4x64xf32>, vector<4x64xf32> -> vector<16x64xf32>
    %c0_13 = arith.constant 0 : index
    %c0_14 = arith.constant 0 : index
    %67 = vector.load %arg4[%c0_13, %c0_14] : memref<16x16xf32, #tpu.memory_space<vmem>>, vector<16x16xf32>
    %cst_15 = arith.constant dense<0.000000e+00> : vector<16x64xf32>
    %68 = tpu.matmul %67, %66, %cst_15 {dimension_numbers = #tpu.dot_dimension_numbers<[1], [0], [0], [1], [0, 0, 1, 1], [], []>} : vector<16x16xf32>, vector<16x64xf32>, vector<16x64xf32> -> vector<16x64xf32>
    %69 = arith.mulf %66, %68 : vector<16x64xf32>
    %cst_16 = arith.constant dense<0.000000e+00> : vector<64xf32>
    %70 = vector.multi_reduction <add>, %69, %cst_16 [0] : vector<16x64xf32> to vector<64xf32>
    %71 = vector.shape_cast %70 : vector<64xf32> to vector<1x64xf32>
    %72 = vector.broadcast %71 : vector<1x64xf32> to vector<8x64xf32>
    %73 = arith.mulf %19, %72 : vector<8x64xf32>
    %cst_17 = arith.constant dense<0.000000e+00> : vector<8x8xf32>
    %74 = tpu.matmul %73, %25, %cst_17 {dimension_numbers = #tpu.dot_dimension_numbers<[1], [1], [0], [0], [0, 0, 1, 0], [], []>} : vector<8x64xf32>, vector<8x64xf32>, vector<8x8xf32> -> vector<8x8xf32>
    %cst_18 = arith.constant 5.000000e-01 : f32
    %75 = vector.broadcast %cst_18 : f32 to vector<8x8xf32>
    %76 = arith.mulf %74, %75 : vector<8x8xf32>
    %cst_19 = arith.constant dense<0xFF800000> : vector<8xf32>
    %77 = vector.multi_reduction <maximumf>, %76, %cst_19 [1] : vector<8x8xf32> to vector<8xf32>
    %78 = vector.shape_cast %77 : vector<8xf32> to vector<8x1xf32>
    %79 = vector.broadcast %78 : vector<8x1xf32> to vector<8x8xf32>
    %80 = arith.subf %76, %79 : vector<8x8xf32>
    %81 = math.exp %80 : vector<8x8xf32>
    %cst_20 = arith.constant dense<0.000000e+00> : vector<8xf32>
    %82 = vector.multi_reduction <add>, %81, %cst_20 [1] : vector<8x8xf32> to vector<8xf32>
    %83 = vector.shape_cast %82 : vector<8xf32> to vector<8x1xf32>
    %84 = tpu.reciprocal %83 {approx = true} : vector<8x1xf32> -> vector<8x1xf32>
    %85 = vector.broadcast %84 : vector<8x1xf32> to vector<8x8xf32>
    %86 = arith.mulf %81, %85 : vector<8x8xf32>
    %cst_21 = arith.constant dense<0.000000e+00> : vector<8x4xf32>
    %87 = tpu.matmul %86, %11, %cst_21 {dimension_numbers = #tpu.dot_dimension_numbers<[1], [1], [0], [0], [0, 0, 1, 0], [], []>} : vector<8x8xf32>, vector<4x8xf32>, vector<8x4xf32> -> vector<8x4xf32>
    %c0_22 = arith.constant 0 : index
    %c0_23 = arith.constant 0 : index
    %88 = vector.load %arg5[%c0_22, %c0_23] : memref<4x32xf32, #tpu.memory_space<vmem>>, vector<4x32xf32>
    %cst_24 = arith.constant dense<0.000000e+00> : vector<8x32xf32>
    %89 = tpu.matmul %87, %88, %cst_24 {dimension_numbers = #tpu.dot_dimension_numbers<[1], [0], [0], [1], [0, 0, 1, 1], [], []>} : vector<8x4xf32>, vector<4x32xf32>, vector<8x32xf32> -> vector<8x32xf32>
    %c0_25 = arith.constant 0 : index
    %c0_26 = arith.constant 0 : index
    %90 = vector.load %arg6[%c0_25, %c0_26] : memref<1x32xf32, #tpu.memory_space<vmem>>, vector<1x32xf32>
    %91 = vector.broadcast %90 : vector<1x32xf32> to vector<8x32xf32>
    %92 = arith.addf %89, %91 : vector<8x32xf32>
    %c0_27 = arith.constant 0 : index
    %c0_28 = arith.constant 0 : index
    %c0_29 = arith.constant 0 : index
    %93 = vector.load %arg7[%c0_27, %c0_28, %c0_29] : memref<1x8x32xf32, #tpu.memory_space<vmem>>, vector<1x8x32xf32>
    %94 = vector.shape_cast %93 : vector<1x8x32xf32> to vector<8x32xf32>
    %95 = vector.shape_cast %92 : vector<8x32xf32> to vector<1x8x32xf32>
    tpu.vector_store %arg7[%c0_27, %c0_28, %c0_29], %95 {strides = array<i32>} : memref<1x8x32xf32, #tpu.memory_space<vmem>>, vector<1x8x32xf32>,
    %c0_30 = arith.constant 0 : index
    %c0_31 = arith.constant 0 : index
    %c0_32 = arith.constant 0 : index
    %96 = vector.load %arg8[%c0_30, %c0_31, %c0_32] : memref<1x8x8xf32, #tpu.memory_space<vmem>>, vector<1x8x8xf32>
    %97 = vector.shape_cast %96 : vector<1x8x8xf32> to vector<8x8xf32>
    %98 = vector.shape_cast %86 : vector<8x8xf32> to vector<1x8x8xf32>
    tpu.vector_store %arg8[%c0_30, %c0_31, %c0_32], %98 {strides = array<i32>} : memref<1x8x8xf32, #tpu.memory_space<vmem>>, vector<1x8x8xf32>,
    return
  }
  func.func @transform_0(%arg0: i32) -> (i32, i32, i32) {
    %c0_i32 = arith.constant 0 : i32
    %c0_i32_0 = arith.constant 0 : i32
    %c0_i32_1 = arith.constant 0 : i32
    return %arg0, %c0_i32, %c0_i32_0 : i32, i32, i32
  }
  func.func @transform_1(%arg0: i32) -> (i32, i32) {
    %c0_i32 = arith.constant 0 : i32
    %c0_i32_0 = arith.constant 0 : i32
    %c0_i32_1 = arith.constant 0 : i32
    return %c0_i32, %c0_i32_0 : i32, i32
  }
  func.func @transform_2(%arg0: i32) -> (i32, i32) {
    %c0_i32 = arith.constant 0 : i32
    %c0_i32_0 = arith.constant 0 : i32
    %c0_i32_1 = arith.constant 0 : i32
    return %c0_i32, %c0_i32_0 : i32, i32
  }
  func.func @transform_3(%arg0: i32) -> (i32, i32) {
    %c0_i32 = arith.constant 0 : i32
    %c0_i32_0 = arith.constant 0 : i32
    %c0_i32_1 = arith.constant 0 : i32
    return %c0_i32, %c0_i32_0 : i32, i32
  }
  func.func @transform_4(%arg0: i32) -> (i32, i32) {
    %c0_i32 = arith.constant 0 : i32
    %c0_i32_0 = arith.constant 0 : i32
    %c0_i32_1 = arith.constant 0 : i32
    return %c0_i32, %c0_i32_0 : i32, i32
  }
  func.func @transform_5(%arg0: i32) -> (i32, i32) {
    %c0_i32 = arith.constant 0 : i32
    %c0_i32_0 = arith.constant 0 : i32
    %c0_i32_1 = arith.constant 0 : i32
    return %c0_i32, %c0_i32_0 : i32, i32
  }
  func.func @transform_6(%arg0: i32) -> (i32, i32, i32) {
    %c0_i32 = arith.constant 0 : i32
    %c0_i32_0 = arith.constant 0 : i32
    %c0_i32_1 = arith.constant 0 : i32
    return %arg0, %c0_i32, %c0_i32_0 : i32, i32, i32
  }
  func.func @transform_7(%arg0: i32) -> (i32, i32, i32) {
    %c0_i32 = arith.constant 0 : i32
    %c0_i32_0 = arith.constant 0 : i32
    %c0_i32_1 = arith.constant 0 : i32
    return %arg0, %c0_i32, %c0_i32_0 : i32, i32, i32
  }
}

</mosaic_0001>

<bundles_post_ra>
// kernel: quantum_attention_pallas.1
= control target key start
LH: loop header
LB: loop body
LE: loop exit
PB: predicated region body
PF: predicated region fallthrough
CT: control target
= control target key end

     0   :  { %13 = vsyncpa [#allocation3], 0  ;;  %s1841_s0 = inlined_call_operand.vmem [shape: f32[2,32,8], index: 0, kind: input, shape index: {}]   ;;  %s1842_s1 = inlined_call_operand.vmem [shape: f32[12,32], index: 1, kind: input, shape index: {}]   ;;  %s1843_s2 = inlined_call_operand.vmem [shape: f32[12,1], index: 2, kind: input, shape index: {}]   ;;  %s1844_s3 = inlined_call_operand.vmem [shape: f32[16,16], index: 3, kind: input, shape index: {}]   ;;  %s1845_s4 = inlined_call_operand.vmem [shape: f32[4,32], index: 4, kind: input, shape index: {}]   ;;  %s1846_s5 = inlined_call_operand.vmem [shape: f32[1,32], index: 5, kind: input, shape index: {}]   ;;  %s1847_s6 = inlined_call_operand.hbm [shape: f32[2,8,32], index: 6, kind: output, shape index: {0}]   ;;  %s1848_s7 = inlined_call_operand.hbm [shape: f32[2,8,8], index: 7, kind: output, shape index: {1}]  }
   0x1   :  { %15 = vsyncpa [#allocation3 + $0x1], 0 }
   0x2   :  { %16 = vsyncpa [#allocation5], 0 }
   0x3   :  { %18 = vsyncpa [#allocation5 + $0x1], 0  ;;  %s1612_s24 = smov 0   ;;  %s1614_s25 = smov 0  }
   0x4   :  { %s1616_s26 = smov 0   ;;  %s1618_s27 = smov 0  }
   0x5 LB: > { %s1633_s28 = sadd.s32 4294967295, %s1558_s27   ;;  %s1295_s29 = sadd.s32 4294967294, %s1558_s27   ;;  %s1558_s27 = sphi %s1618_s27, %s1862_s27   ;;  %s1554_s26 = sphi %s1616_s26, %s1861_s26   ;;  %s1550_s25 = sphi %s1614_s25, %s1860_s25   ;;  %s1546_s24 = sphi %s1612_s24, %s1859_s24  }
   0x6   : > { %s1637_s30 = sadd.s32 1, %s1558_s27   ;;  %s162_s8 = sadd.s32 1, %s1554_s26 }
   0x7   : > { %s159_s9 = ssub.s32 %s1558_s27, %s1637_s30  ;;  %p172_p0 = scmp.ne.s32.totalorder %s1554_s26, %s1550_s25 }
   0x8   : > { %p160_p1 = scmp.eq.s32.totalorder %s159_s9, 0  ;;  %p173_p2 = scmp.eq.s32.totalorder %s1633_s28, 1 }
   0x9   : > { %p178_p3 = scmp.ne.s32.totalorder %s1550_s25, %s1546_s24  ;;  %p179_p4 = scmp.eq.s32.totalorder %s1295_s29, 1 }
   0xa   : > { %s1648_s10 = scalar_select %p160_p1, %s1554_s26, %s162_s8  }
   0xb   : > { %p1650_p5 = por %p173_p2, %p172_p0  ;;  %p1654_p6 = por %p179_p4, %p178_p3 }
   0xc   : > { %p1298_p7 = scmp.ge.s32.totalorder %s1558_s27, 1  ;;  %p246_p8 = scmp.lt.s32.totalorder %s1558_s27, 3 }
   0xe   : > { %p247_p9 = pnand %p1298_p7, %p246_p8 }
   0xf   : > { %p283_p10 = scmp.lt.s32.totalorder (!%p247_p9), %s1633_s28, 1  ;;  %s1570_s14 = smov (!%p247_p9), [#allocation4]  }
  0x10   : > { %250 = sbr.rel (%p247_p9) target bundleno = 1685 (0x695), region = 44  ;;  %s1472_s15 = sshll.u32 (!%p247_p9), %s1570_s14, 4  ;;  %s1473_s15 = int_to_ptr.vmem [resolvable:$false] %s1472_s15 }
  0x11   : > { %s1474_s16 = scalar_lea.vmem (!%p247_p9), %s1473_s15, 256 }
  0x15   : > { %v292_v0 = vld [vmem:[%s1842_s1] sm:$0xff]  ;;  %vm306_vm0 = vcmask 261120   ;;  %v1560_v1 = vmov 0   ;;  %s284_s17 = scalar_select %p283_p10, %s1633_s28, 1  ;;  %v293_v7 = vld [vmem:[%s1842_s1 + $0x8] sm:$0xf]  ;;  %v389_v8 = vlaneseq }
  0x16   : > { %1361 = vmatprep.mubr.msk.f32.mxu0 %vm306_vm0, %v292_v0  ;;  %1454 = vset.pattern.permute.xlu0 %v1560_v1  ;;  %v294_v2 = vld [vmem:[%s1843_s2] sm:$0xff]  ;;  %v1561_v9 = vmov 0.0   ;;  %vm1562_vm1 = vmmov 0   ;;  %v1563_v14 = vmov 1.0   ;;  %vm401_vm3 = vcmask 64512  }
  0x17   : > { %298 = vperm.xlu0 %1454, %v294_v2   ;;  %1455 = vset.pattern.permute.xlu1 %v1560_v1  ;;  %s1332_s18 = sshll.u32 %s284_s17, 5  ;;  %v1679_v10 = vshrl.u32 %v389_v8, 7  ;;  %v392_v11 = vand.u32 127, %v389_v8  ;;  %v824_v23 = vld [vmem:[%s1844_s3] sm:$0xff]  ;;  %vm826_vm5 = vcmask 130048  }
  0x18   : > { %s287_s21 = scalar_lea.vmem %s1841_s0, %s1332_s18  ;;  %1364 = vmatprep.subr.mxu1 %v1561_v9  ;;  %1366 = vmatprep.mubr.msk.f32.mxu1 %vm1562_vm1, %v1561_v9  ;;  %v1564_v41 = vmov 683565275   ;;  %v1565_v43 = vmov 2475754826   ;;  %v1566_v46 = vmov 2131351028  }
  0x19   : > { %v291_v3 = vld [vmem:[%s287_s21 + $0x18] sm:$0xff]  ;;  %v290_v4 = vld [vmem:[%s287_s21 + $0x10] sm:$0xff]  ;;  %v289_v5 = vld [vmem:[%s287_s21 + $0x8] sm:$0xff]  ;;  %v396_v12 = vand.u32 7, %v392_v11  ;;  %v393_v19 = vshra.s32 %v392_v11, 3  ;;  %s1768_s18 = sand.u32 1, %s1550_s25  }
  0x1a   : > { %1353 = vmatprep.subr.mxu0 %v291_v3  ;;  %v288_v6 = vld [vmem:[%s287_s21] sm:$0xff]  ;;  %v1567_v49 = vmov 2102212464   ;;  %v1568_v52 = vmov 920167782   ;;  %s1850_s19 = sshll.u32 %s1768_s18, 3 }
  0x1b   : > { %1354 = vmatpush3.msra.mxu0 %v291_v3  ;;  %vm1685_vm2 = vcmp.eq.s32.totalorder %v396_v12, %v1679_v10  ;;  %vm1695_vm4 = vcmp.eq.s32.totalorder %v393_v19, %v1679_v10  ;;  %v1569_v55 = vmov 1326507024   ;;  %s282_s20 = scalar_lea.vmem [#allocation4], %s1850_s19  ;;  %s1849_s21 = sshll.u32 %s1633_s28, 7 }
  0x1c   : > { %1355 = vmatprep.subr.mxu0 %v290_v4  ;;  %1365 = vmatpush3.msk.msra.mxu1 %vm1685_vm2, %v1563_v14  ;;  %s1202_s29 = scalar_lea.hbm %s1848_s7, %s1849_s21  ;;  %s1204_s8 = sshll.u32 %s282_s20, 4  ;;  %s1205_s8 = int_to_ptr.vmem [resolvable:$true] %s1204_s8 }
  0x1d   : > { %1356 = vmatpush3.msra.mxu0 %v290_v4  ;;  %1369 = vmatprep.subr.mxu1 %v1561_v9  ;;  %s1178_s9 = scalar_lea.sflag [#allocation5], %s1768_s18  ;;  %s1468_s13 = scalar_lea.vmem %s1205_s8, 128 }
  0x1e   : > { %1357 = vmatprep.subr.mxu0 %v289_v5  ;;  %p1469_p11 = scmp.ne.s32.totalorder %s1205_s8, %s1468_s13  ;;  %p1475_p0 = scmp.lt.s32.totalorder %s1205_s8, %s1473_s15 }
  0x1f   : > { %1358 = vmatpush3.msra.mxu0 %v289_v5  ;;  %p1476_p1 = scmp.lt.s32.totalorder %s1474_s16, %s1468_s13 }
  0x20   : > { %1359 = vmatprep.subr.mxu0 %v288_v6  ;;  %p1470_p12 = pnand %p1469_p11, %p1650_p5 }
  0x21   : > { %1360 = vmatpush3.msra.mxu0 %v288_v6  ;;  %p1477_p2 = por %p1476_p1, %p1475_p0 }
  0x22   : > { %1362 = vmatmul.mubr.msk.f32.vlgmr.msra.gmra.mxu0 %vm306_vm0, %v293_v7  ;;  %1381 = vmatprep.subr.mxu0 %v1561_v9  ;;  %p1471_p13 = pneg %p1470_p12 }
  0x23   : > { %1383 = vmatprep.mubr.msk.f32.mxu0 %vm1562_vm1, %v1561_v9 }
  0x24   : > { %p1478_p3 = pnand %p1477_p2, %p1471_p13 }
  0x92   : > { %v299_v16 = vpop.permute.xlu0 %298 }
  0xe2   : > { %v1692_v15 = vpop.f32.mrf.mxu0 }
  0xe4   : > { %v379_v17 = vpop.f32.mrf.mxu0 }
  0xe5   : > { %v380_v18 = vadd.f32 %v379_v17, %v299_v16 }
  0xe7   : > { %1456 = vtanh.f32 %v380_v18 }
  0xf4   : > { %v1457_v20 = vpop.eup %1456 }
  0xf5   : > { %v400_v21 = vrot.slane %v1457_v20, 4 }
  0xf7   : > { %1367 = vmatmul.mubr.msk.f32.vlgmr.msra.gmra.mxu1 %vm401_vm3, %v400_v21 }
  0xf8   : > { %1370 = vmatpush3.msk.msra.mxu1 %vm1695_vm4, %v1563_v14  ;;  %1371 = vmatprep.mubr.msk.f32.mxu1 %vm1562_vm1, %v1561_v9 }
  0xfb   : > { %1372 = vmatmul.mubr.msk.f32.vlgmr.msra.gmra.mxu1 %vm401_vm3, %v1457_v20 }
  0xfc   : > { %1378 = vmatprep.mubr.msk.f32.mxu1 %vm826_vm5, %v824_v23 }
 0x1b7   : > { %v470_v24 = vpop.f32.mrf.mxu1 }
 0x1b9   : > { %v1368_v25 = vpop.f32.mrf.mxu1 }
 0x1bb   : > { %v542_v26 = vpop.f32.mrf.mxu1 }
 0x1bc   : > { %v543_v27 = vadd.f32 %v542_v26, %v470_v24 }
 0x1bd   : > { %v1373_v28 = vpop.f32.mrf.mxu1 }
 0x1be   : > { %1458 = vtanh.f32 %v543_v27 }
 0x1cb   : > { %v1459_v29 = vpop.eup %1458 }
 0x1cc   : > { %v1709_v30 = vmul.f32 0.5, %v1459_v29 }
 0x1ce   : > { %v551_v31 = vand.u32 2139095040, %v1709_v30  ;;  %v548_v35 = vand.u32 2147483647, %v1709_v30  ;;  %vm550_vm13 = vcmp.lt.s32.totalorder %v1709_v30, 0 }
 0x1d0   : > { %v552_v32 = vshrl.u32 %v551_v31, 23  ;;  %v555_v38 = vand.u32 8388607, %v548_v35  ;;  %vm549_vm14 = vcmp.le.f32.partialorder %v548_v35, 0.7853982  ;;  %v783_v35 = vsub.s32 2, %v1679_v10 }
 0x1d2   : > { %v1309_v33 = vadd.s32 4294967169, %v552_v32  ;;  %v556_v57 = vor.u32 8388608, %v555_v38 }
 0x1d4   : > { %v558_v34 = vadd.s32 1, %v1309_v33  ;;  %v596_v7 = vshll.u32 %v556_v57, 8 }
 0x1d6   : > { %vm559_vm6 = vcmp.gt.s32.totalorder %v558_v34, 0 }
 0x1d7   : > { %v560_v36 = vsel %vm559_vm6, %v558_v34, 0 }
 0x1d8   : > { %v562_v37 = vand.u32 31, %v560_v36  ;;  %v561_v40 = vshrl.u32 %v560_v36, 5 }
 0x1da   : > { %v563_v39 = vsub.s32 32, %v562_v37  ;;  %v565_v42 = vshll.u32 %v1564_v41, %v562_v37  ;;  %v568_v44 = vshll.u32 %v1565_v43, %v562_v37  ;;  %v571_v48 = vshll.u32 %v1566_v46, %v562_v37 }
 0x1db   : > { %v574_v51 = vshll.u32 %v1567_v49, %v562_v37  ;;  %v577_v54 = vshll.u32 %v1568_v52, %v562_v37  ;;  %vm580_vm7 = vcmp.lt.s32.totalorder %v561_v40, 1  ;;  %vm583_vm8 = vcmp.lt.s32.totalorder %v561_v40, 4 }
 0x1dc   : > { %v566_v45 = vshrl.u32 %v1565_v43, %v563_v39  ;;  %v569_v47 = vshrl.u32 %v1566_v46, %v563_v39  ;;  %v572_v50 = vshrl.u32 %v1567_v49, %v563_v39  ;;  %v575_v53 = vshrl.u32 %v1568_v52, %v563_v39 }
 0x1dd   : > { %v578_v56 = vshrl.u32 %v1569_v55, %v563_v39  ;;  %v564_v2 = vshrl.u32 %v1564_v41, %v563_v39  ;;  %vm582_vm9 = vcmp.lt.s32.totalorder %v561_v40, 3  ;;  %vm581_vm10 = vcmp.lt.s32.totalorder %v561_v40, 2 }
 0x1de   : > { %v567_v58 = vor.u32 %v566_v45, %v565_v42  ;;  %v570_v59 = vor.u32 %v569_v47, %v568_v44  ;;  %v573_v60 = vor.u32 %v572_v50, %v571_v48  ;;  %v576_v61 = vor.u32 %v575_v53, %v574_v51 }
 0x1df   : > { %v579_v62 = vor.u32 %v578_v56, %v577_v54 }
 0x1e0   : > { %v585_v63 = vsel %vm583_vm8, %v573_v60, 2102212464  ;;  %v588_v0 = vsel %vm580_vm7, %v567_v58, %v570_v59  ;;  %v592_v1 = vsel %vm580_vm7, %v570_v59, %v573_v60  ;;  %v589_v3 = vsel %vm583_vm8, %v576_v61, 920167782 }
 0x1e1   : > { %v593_v4 = vsel %vm583_vm8, %v579_v62, 1326507024  ;;  %v590_v5 = vsel %vm582_vm9, %v573_v60, %v589_v3  ;;  %v584_v8 = vsel %vm580_vm7, %v564_v2, %v567_v58  ;;  %v586_v11 = vsel %vm582_vm9, %v570_v59, %v585_v63 }
 0x1e2   : > { %v594_v6 = vsel %vm582_vm9, %v576_v61, %v593_v4  ;;  %v591_v12 = vsel %vm581_vm10, %v588_v0, %v590_v5  ;;  %v587_v20 = vsel %vm581_vm10, %v584_v8, %v586_v11  ;;  %v762_v61 = vsub.s32 0, %v1679_v10 }
 0x1e3   : > { %v595_v14 = vsel %vm581_vm10, %v592_v1, %v594_v6  ;;  %v1718_v18 = vmul.u32.u64.low %v596_v7, %v591_v12  ;;  %v1719_v19 = vmul.u32.u64.high %v596_v7, %v591_v12, %v1718_v18  ;;  %v603_v23 = vmul.u32 %v596_v7, %v587_v20 }
 0x1e4   : > { %v1715_v16 = vmul.u32.u64.low %v596_v7, %v595_v14  ;;  %v1716_v17 = vmul.u32.u64.high %v596_v7, %v595_v14, %v1715_v16 }
 0x1e5   : > { %v606_v21 = vadd.s32 1, %v1719_v19 }
 0x1e6   : > { %vm605_vm11 = vc.u32 %v1716_v17, %v1718_v18  ;;  %v604_v37 = vadd.s32 %v1718_v18, %v1716_v17 }
 0x1e7   : > { %v607_v24 = vsel %vm605_vm11, %v606_v21, %v1719_v19  ;;  %vm640_vm11 = vweird.f32 %v1709_v30 }
 0x1e8   : > { %v608_v25 = vadd.s32 %v607_v24, %v603_v23  ;;  %v812_v23 = vsub.s32 3, %v1679_v10 }
 0x1ea   : > { %v609_v26 = vadd.s32 536870912, %v608_v25 }
 0x1ec   : > { %v610_v27 = vshrl.u32 %v609_v26, 30 }
 0x1ee   : > { %v611_v28 = vshll.u32 %v610_v27, 30  ;;  %v634_v50 = vsub.s32 4, %v610_v27 }
 0x1f0   : > { %v612_v29 = vsub.s32 %v608_v25, %v611_v28  ;;  %v635_v53 = vsel %vm550_vm13, %v634_v50, %v610_v27  ;;  %v802_v25 = vsub.s32 1, %v1679_v10 }
 0x1f1   : > { %v637_v54 = vsel %vm549_vm14, 0, %v635_v53 }
 0x1f2   : > { %v614_v31 = vsub.s32 0, %v612_v29  ;;  %v744_v55 = vadd.s32 3, %v637_v54  ;;  %v641_v56 = vand.u32 3, %v637_v54 }
 0x1f4   : > { %v1310_v32 = vmin.u32 %v614_v31, %v612_v29  ;;  %v745_v57 = vand.u32 3, %v744_v55  ;;  %vm646_vm15 = vcmp.eq.s32.totalorder %v641_v56, 2  ;;  %vm643_vm7 = vcmp.eq.s32.totalorder %v641_v56, 0 }
 0x1f5   : > { %vm642_vm9 = vcmp.lt.s32.totalorder %v641_v56, 2  ;;  %v395_v56 = vsel %vm1695_vm4, 1.0, %v1561_v9 }
 0x1f6   : > { %v616_v33 = vclz %v1310_v32  ;;  %vm750_vm6 = vcmp.eq.s32.totalorder %v745_v57, 2  ;;  %vm747_vm8 = vcmp.eq.s32.totalorder %v745_v57, 0  ;;  %vm746_vm10 = vcmp.lt.s32.totalorder %v745_v57, 2 }
 0x1f8   : > { %v1311_v34 = vadd.s32 4294967294, %v616_v33 }
 0x1fa   : > { %vm1312_vm12 = vcmp.lt.s32.totalorder %v1311_v34, 0 }
 0x1fb   : > { %v619_v36 = vsel %vm1312_vm12, 0, %v1311_v34  ;;  %vm758_vm12 = vcmask 1040384  }
 0x1fc   : > { %v620_v38 = vsub.s32 32, %v619_v36  ;;  %v624_v39 = vsub.s32 4294967266, %v619_v36  ;;  %v621_v40 = vshll.u32 %v612_v29, %v619_v36 }
 0x1fe   : > { %v622_v41 = vshrl.u32 %v604_v37, %v620_v38  ;;  %v625_v42 = vadd.s32 127, %v624_v39 }
 0x200   : > { %v623_v43 = vor.u32 %v622_v41, %v621_v40  ;;  %v626_v44 = vshll.u32 %v625_v42, 23 }
 0x202   : > { %v627_v45 = vor.u32 4788187, %v626_v44  ;;  %v630_v47 = vcvt.s32.f32 %v623_v43  ;;  %v825_v43 = vld [vmem:[%s1844_s3 + $0x8] sm:$0xff]  ;;  %v398_v44 = vsel %vm1685_vm2, 1.0, %v1561_v9 }
 0x204   : > { %v628_v46 = vand.u32 2147483647, %v627_v45 }
 0x206   : > { %v631_v48 = vmul.f32 %v630_v47, %v628_v46 }
 0x208   : > { %v632_v49 = vxor.u32 2147483648, %v631_v48 }
 0x20a   : > { %v633_v51 = vsel %vm550_vm13, %v632_v49, %v631_v48  ;;  %vm773_vm13 = vcmask 1041408  }
 0x20b   : > { %v636_v52 = vsel %vm549_vm14, %v1709_v30, %v633_v51  ;;  %vm821_vm14 = vcmask 1043456  }
 0x20c   : > { %1460 = vcosq.f32 %v636_v52 }
 0x20d   : > { %1462 = vsinq.f32 %v636_v52 }
 0x219   : > { %v1461_v58 = vpop.eup %1460 }
 0x21a   : > { %v1463_v59 = vpop.eup %1462  ;;  %v647_v60 = vxor.u32 2147483648, %v1461_v58 }
 0x21b   : > { %v644_v62 = vxor.u32 2147483648, %v1463_v59 }
 0x21c   : > { %v648_v63 = vsel %vm646_vm15, %v647_v60, %v1463_v59  ;;  %v752_v0 = vsel %vm750_vm6, %v647_v60, %v1463_v59  ;;  %vm910_vm15 = vcmask 523264  }
 0x21d   : > { %v645_v1 = vsel %vm643_vm7, %v1461_v58, %v644_v62  ;;  %v749_v2 = vsel %vm747_vm8, %v1461_v58, %v644_v62  ;;  %1382 = vmatpush3.xpose.msk.msra.mxu0 %vm910_vm15, %v398_v44 }
 0x21e   : > { %v649_v3 = vsel %vm642_vm9, %v645_v1, %v648_v63  ;;  %v753_v4 = vsel %vm746_vm10, %v749_v2, %v752_v0  ;;  %1391 = vmatprep.subr.mxu0 %v1561_v9  ;;  %v295_v2 = vld [vmem:[%s1843_s2 + $0x8] sm:$0xf] }
 0x21f   : > { %v650_v5 = vsel %vm640_vm11, nan, %v649_v3  ;;  %v754_v6 = vsel %vm640_vm11, nan, %v753_v4 }
 0x220   : > { %v756_v7 = vrot.slane %v650_v5, 1  ;;  %v768_v8 = vrot.slane %v754_v6, %v762_v61  ;;  %v775_v11 = vrot.slane %v650_v5, 3  ;;  %v763_v12 = vrot.slane %v650_v5, %v762_v61 }
 0x221   : > { %v778_v14 = vrot.slane %v754_v6, 2  ;;  %v789_v16 = vrot.slane %v754_v6, %v783_v35  ;;  %v784_v20 = vrot.slane %v650_v5, %v783_v35 }
 0x222   : > { %v759_v17 = vsel %vm758_vm12, %v756_v7, %v754_v6 }
 0x223   : > { %v769_v18 = vmul.f32 %v768_v8, %v759_v17  ;;  %v780_v19 = vsel %vm758_vm12, %v775_v11, %v778_v14  ;;  %v764_v30 = vmul.f32 %v763_v12, %v759_v17 }
 0x224   : > { %v790_v21 = vmul.f32 %v789_v16, %v780_v19  ;;  %v785_v28 = vmul.f32 %v784_v20, %v780_v19 }
 0x225   : > { %v771_v24 = vrot.slane %v769_v18, 6 }
 0x226   : > { %v792_v26 = vrot.slane %v790_v21, 6 }
 0x227   : > { %v774_v27 = vsel %vm773_vm13, %v764_v30, %v771_v24 }
 0x228   : > { %v808_v29 = vrot.slane %v774_v27, %v783_v35  ;;  %v813_v31 = vrot.slane %v774_v27, %v812_v23  ;;  %v794_v32 = vsel %vm773_vm13, %v785_v28, %v792_v26  ;;  %v803_v33 = vrot.slane %v774_v27, %v802_v25 }
 0x229   : > { %v798_v36 = vrot.slane %v774_v27, %v762_v61 }
 0x22a   : > { %v814_v34 = vmul.f32 %v813_v31, %v794_v32  ;;  %v804_v37 = vmul.f32 %v803_v33, %v794_v32  ;;  %v809_v38 = vmul.f32 %v808_v29, %v794_v32 }
 0x22b   : > { %v799_v42 = vmul.f32 %v798_v36, %v794_v32 }
 0x22c   : > { %v819_v39 = vrot.slane %v814_v34, 4  ;;  %v816_v40 = vrot.slane %v804_v37, 4 }
 0x22e   : > { %v823_v41 = vsel %vm821_vm14, %v809_v38, %v819_v39  ;;  %v822_v10 = vsel %vm821_vm14, %v799_v42, %v816_v40 }
 0x22f   : > { %1374 = vmatprep.subr.mxu1 %v823_v41 }
 0x230   : > { %1375 = vmatpush3.msra.mxu1 %v823_v41 }
 0x231   : > { %1376 = vmatprep.subr.mxu1 %v822_v10 }
 0x232   : > { %1377 = vmatpush3.msra.mxu1 %v822_v10 }
 0x233   : > { %1379 = vmatmul.mubr.msk.f32.vlgmr.msra.gmra.mxu1 %vm826_vm5, %v825_v43  ;;  %1386 = vmatprep.subr.mxu1 %v1561_v9 }
 0x234   : > { %1388 = vmatprep.mubr.msk.f32.mxu1 %vm1562_vm1, %v1561_v9 }
 0x2f3   : > { %v1380_v45 = vpop.f32.mrf.mxu1 }
 0x2f4   : > { %v909_v46 = vmul.f32 %v1380_v45, %v823_v41 }
 0x2f5   : > { %v899_v47 = vpop.f32.mrf.mxu1 }
 0x2f6   : > { %v908_v48 = vmul.f32 %v899_v47, %v822_v10  ;;  %v912_v49 = vsel %vm910_vm15, %v909_v46, 0.0 }
 0x2f8   : > { %v911_v50 = vsel %vm910_vm15, %v908_v48, 0.0 }
 0x2f9   : > { %v913_v51 = vadd.f32 %v912_v49, %v911_v50 }
 0x2fb   : > { %v914_v52 = vrot.slane %v913_v51, 4 }
 0x2fd   : > { %v915_v53 = vadd.f32 %v914_v52, %v913_v51 }
 0x2ff   : > { %v916_v54 = vrot.slane %v915_v53, 2 }
 0x301   : > { %v917_v55 = vadd.f32 %v916_v54, %v915_v53 }
 0x303   : > { %v918_v13 = vrot.slane %v917_v55, 1 }
 0x305   : > { %v919_v57 = vadd.f32 %v918_v13, %v917_v55 }
 0x307   : > { %v920_v58 = vmul.f32 %v919_v57, %v395_v56 }
 0x309   : > { %1384 = vmatmul.mubr.msk.f32.vlgmr.msra.gmra.mxu0 %vm910_vm15, %v920_v58 }
 0x30a   : > { %1393 = vmatprep.mubr.msk.f32.mxu0 %vm1562_vm1, %v1561_v9  ;;  %v1085_v9 = vld [vmem:[%s1845_s4] sm:$0xf]  ;;  %vm1093_vm1 = vcmask 31744  }
 0x30b   : > { %1392 = vmatpush3.msk.msra.mxu0 %vm821_vm14, %v1085_v9 }
 0x3c9   : > { %v993_v59 = vpop.f32.mrf.mxu0 }
 0x3ca   : > { %v997_v60 = vmul.f32 0.5, %v993_v59 }
 0x3cb   : > { %v1385_v61 = vpop.f32.mrf.mxu0 }
 0x3cc   : > { %v998_v62 = vsel %vm401_vm3, %v997_v60, -inf }
 0x3cd   : > { %999 = vmax.xlane.f32.xlu0 %v998_v62 }
 0x456   : > { %v1000_v35 = vpop.xlane.xlu0 %999 }
 0x457   : > { %v1001_v63 = vsub.f32 %v997_v60, %v1000_v35 }
 0x459   : > { %v1002_v0 = vmul.f32 1.442695, %v1001_v63 }
 0x45b   : > { %1464 = vpow2.f32 %v1002_v0 }
 0x468   : > { %v1465_v22 = vpop.eup %1464 }
 0x469   : > { %v1004_v1 = vsel %vm401_vm3, %v1465_v22, 0.0 }
 0x46a   : > { %1005 = vadd.xlane.f32.xlu1 %v1004_v1 }
 0x47b   : > { %303 = vperm.xlu1 %1455, %v295_v2  }
 0x4f3   : > { %v1006_v3 = vpop.xlane.xlu1 %1005 }
 0x4f4   : > { %1466 = vrcp.f32 %v1006_v3 }
 0x4f7   : > { %v304_v4 = vpop.permute.xlu1 %303 }
 0x4f8   : > { %v385_v5 = vadd.f32 %v1692_v15, %v304_v4 }
 0x4fa   : > { %1387 = vmatpush3.xpose.msk.msra.mxu1 %vm401_vm3, %v385_v5 }
 0x501   : > { %v1467_v6 = vpop.eup %1466 }
 0x502   : > { %v1008_v7 = vmul.f32 %v1467_v6, %v1465_v22 }
 0x504   : > { %1389 = vmatmul.mubr.msk.f32.vlgmr.msra.gmra.mxu1 %vm401_vm3, %v1008_v7  ;;  %1171 = vst.msk [vmem:[%s282_s20] sm:$0xff] %vm401_vm3, %v1008_v7 }
 0x5c4   : > { %v1081_v8 = vpop.f32.mrf.mxu1 }
 0x5c5   : > { %1394 = vmatmul.mubr.msk.f32.vlgmr.msra.gmra.mxu0 %vm1093_vm1, %v1081_v8 }
 0x5c6   : > { %v1390_v15 = vpop.f32.mrf.mxu1 }
 0x5c7   : > { %1481 = shalt.err (!%p1478_p3)
}
 0x5c8   : > { %s1482_s17 = scalar_lea.hbm %s1202_s29, 128  ;;  %s1486_s23 = scalar_lea.hbm %s1848_s7, 256 }
 0x5c9   : > { %p1483_p4 = scmp.ne.s32.totalorder %s1202_s29, %s1482_s17  ;;  %p1487_p9 = scmp.lt.s32.totalorder %s1202_s29, %s1848_s7 }
 0x5ca   : > { %p1488_p10 = scmp.lt.s32.totalorder %s1486_s23, %s1482_s17 }
 0x5cb   : > { %p1484_p7 = pnand %p1483_p4, %p1650_p5 }
 0x5cc   : > { %p1489_p11 = por %p1488_p10, %p1487_p9 }
 0x5cd   : > { %p1485_p8 = pneg %p1484_p7 }
 0x5cf   : > { %p1490_p12 = pnand %p1489_p11, %p1485_p8 }
 0x5d1   : > { %1493 = shalt.err (!%p1490_p12)
}
 0x5d2   : > { %1401 = dma.vmem_to_hbm [thread:$0]  (%p1650_p5), %s1205_s8, 128, %s1202_s29, %s1178_s9   ;;  %v1323_v11 = vld [vmem:[%s1846_s5] ss:$0 sm:$0xff] }
 0x5d3   : > { %s1857_s15 = sshll.u32 %s1768_s18, 3  ;;  %s1858_s19 = sshll.u32 %s1633_s28, 7 }
 0x5d4   : > { %s275_s16 = scalar_lea.vmem [#allocation2], %s1857_s15  ;;  %s1804_s22 = scalar_lea.hbm %s1847_s6, %s1858_s19 }
 0x5d5   : > { %s1191_s20 = sshll.u32 %s275_s16, 4  ;;  %s1173_s29 = scalar_lea.sflag [#allocation3], %s1768_s18  ;;  %s1192_s20 = int_to_ptr.vmem [resolvable:$true] %s1191_s20 }
 0x5d6   : > { %s1494_s8 = scalar_lea.vmem %s1192_s20, 128  ;;  %s1571_s9 = smov [#allocation2]  }
 0x5d7   : > { %p1495_p13 = scmp.ne.s32.totalorder %s1192_s20, %s1494_s8  ;;  %s1498_s23 = sshll.u32 %s1571_s9, 4  ;;  %s1499_s23 = int_to_ptr.vmem [resolvable:$false] %s1498_s23 }
 0x5d8   : > { %s1500_s13 = scalar_lea.vmem %s1499_s23, 256  ;;  %p1501_p2 = scmp.lt.s32.totalorder %s1192_s20, %s1499_s23 }
 0x5d9   : > { %p1496_p0 = pnand %p1495_p13, %p1650_p5  ;;  %p1502_p3 = scmp.lt.s32.totalorder %s1500_s13, %s1494_s8 }
 0x5db   : > { %p1497_p1 = pneg %p1496_p0  ;;  %p1503_p4 = por %p1502_p3, %p1501_p2 }
 0x5dd   : > { %p1504_p7 = pnand %p1503_p4, %p1497_p1 }
 0x685   : > { %v1166_v12 = vpop.f32.mrf.mxu0 }
 0x686   : > { %v1167_v14 = vadd.f32 %v1323_v11, %v1166_v12 }
 0x687   : > { %v1395_v16 = vpop.f32.mrf.mxu0 }
 0x688   : > { %1170 = vst.msk [vmem:[%s275_s16] sm:$0xff] %vm306_vm0, %v1167_v14 }
 0x689   : > { %1507 = shalt.err (!%p1504_p7)
}
 0x68a   : > { %s1508_s28 = scalar_lea.hbm %s1804_s22, 128  ;;  %s1512_s15 = scalar_lea.hbm %s1847_s6, 256 }
 0x68b   : > { %p1509_p8 = scmp.ne.s32.totalorder %s1804_s22, %s1508_s28  ;;  %p1513_p11 = scmp.lt.s32.totalorder %s1804_s22, %s1847_s6 }
 0x68c   : > { %p1514_p12 = scmp.lt.s32.totalorder %s1512_s15, %s1508_s28 }
 0x68d   : > { %p1510_p9 = pnand %p1509_p8, %p1650_p5 }
 0x68e   : > { %p1515_p13 = por %p1514_p12, %p1513_p11 }
 0x68f   : > { %p1511_p10 = pneg %p1510_p9 }
 0x691   : > { %p1516_p0 = pnand %p1515_p13, %p1511_p10 }
 0x693   : > { %1519 = shalt.err (!%p1516_p0)
}
 0x694   : > { %1400 = dma.vmem_to_hbm [thread:$0]  (%p1650_p5), %s1192_s20, 128, %s1804_s22, %s1173_s29  }
 0x695 PF: > { %p1411_p1 = scmp.ge.s32.totalorder %s1558_s27, 2  ;;  %s1216_s21 = sand.u32 1, %s1546_s24  }
 0x696   : > { %s1217_s17 = scalar_lea.sflag [#allocation3], %s1216_s21 }
 0x697   : > { %p1405_p2 = pnand %p1411_p1, %p1654_p6 }
 0x699   : > { %p1406_p3 = pneg %p1405_p2 }
 0x69b   : > { %1537 = dma.done.wait (%p1406_p3), %s1217_s17, 128  }
 0x69c   : > { %1539 = vsyncadd (%p1406_p3), %s1217_s17, 4294967168  ;;  %s1226_s8 = scalar_lea.sflag [#allocation5], %s1216_s21 }
 0x69d   : > { %1541 = dma.done.wait (%p1406_p3), %s1226_s8, 128  }
 0x69e   : > { %1543 = vsyncadd (%p1406_p3), %s1226_s8, 4294967168  ;;  %p21_p5 = scmp.ge.s32.totalorder %s1637_s30, 4   ;;  %s1859_s24 = smov %s1550_s25 }
 0x69f   : > { %s1860_s25 = smov %s1554_s26  ;;  %s1861_s26 = smov %s1648_s10 }
 0x6a0   : > { %s1862_s27 = smov %s1637_s30  ;;  %23 = sbr.rel (!%p21_p5) target bundleno = 5 (0x5), region = 96 }
 0x6a5   :  { %1231 = vsyncpa [#allocation3], 1 }
 0x6a6   :  { %1233 = vsyncpa [#allocation3 + $0x1], 1 }
 0x6a7   :  { %1234 = vsyncpa [#allocation5], 1 }
 0x6a8   :  { %1236 = vsyncpa [#allocation5 + $0x1], 1 }

</bundles_post_ra>
